<compile_context>
chip_gen: v5e
topology: v5e:2x2
jax: 0.10.0
libtpu: 0.0.40
codegen_flags: <defaults>
</compile_context>

<pallas_src>
from typing import List

import jax
import jax.numpy as jnp
from jax import lax
from jax.experimental import pallas as pl
from jax.experimental.pallas import tpu as pltpu

# ----------------------------------------------------------------------------
# Electron configuration table (identical to the PyTorch module's buffer)
# ----------------------------------------------------------------------------
ORBITALS = "1s 2s 2p 3s 3p 4s 3d 4p 5s 4d 5p 6s 4f 5d 6p 7s 5f 6d 7p 6f 7d 7f".split()
POSSIBLE_ELECTRONS = dict(s=2, p=6, d=10, f=14)
NUM_ELEMENTS = 119       # rows of the embedding table
NUM_ORBITALS = 22        # columns of the embedding table (== len(ORBITALS))


def _electron_config(atomic_num: int) -> List[int]:
    electron_count, last_idx, config = (0, -1, [])
    for i in ORBITALS:
        if electron_count < atomic_num:
            config.append(POSSIBLE_ELECTRONS[i[-1]])
            electron_count += POSSIBLE_ELECTRONS[i[-1]]
            last_idx += 1
        else:
            config.append(0)
    if electron_count > atomic_num:
        config[last_idx] -= electron_count - atomic_num
    return config


ELECTRON_CONFIG = jnp.asarray(
    [_electron_config(i) for i in range(NUM_ELEMENTS)], dtype=jnp.float32
)  # (119, 22)


# ----------------------------------------------------------------------------
# Pallas kernel: embedding lookup (one-hot matmul) against the pre-fused
# (table @ W) matrix, plus bias.  Single MXU pass per tile.
# ----------------------------------------------------------------------------
def _embedding_kernel(z_ref, fused_ref, b_ref, o_ref):
    # z_ref:     (1, TA)    int32   -- tile of atom indices (TA multiple of 128)
    # fused_ref: (119, Dp)  float32 -- ELECTRON_CONFIG @ W  (padded to Dp lanes)
    # b_ref:     (1, Dp)    float32 -- linear bias (padded)
    # o_ref:     (TA, Dp)   float32 -- output tile (leading batch dim squeezed)
    z = z_ref[0, :]                                   # (TA,)
    ta = z.shape[0]

    # Embedding lookup via one-hot matmul on the MXU (avoids in-kernel gather).
    ids = lax.broadcasted_iota(jnp.int32, (ta, NUM_ELEMENTS), 1)
    onehot = (z[:, None] == ids).astype(jnp.float32)  # (TA, 119)

    out = jnp.dot(onehot, fused_ref[...],
                  preferred_element_type=jnp.float32) + b_ref[...]  # (TA, Dp)
    o_ref[...] = out


def nuclear_embedding(z: jax.Array, weight: jax.Array, bias: jax.Array,
                      *, atoms_per_tile: int = 256) -> jax.Array:
    """z: (1, n_a) int -> (1, n_a, D) float32.

    weight: (22, D) linear weight (stored input-major), bias: (D,).
    Note: for very small n_a a plain jnp.take(...) @ W + b is cheaper than the
    pallas_call launch; this wrapper always dispatches the kernel for demo use.
    """
    assert z.ndim == 2 and z.shape[0] == 1
    n_a = z.shape[1]
    d = weight.shape[1]

    # Pre-fuse the two matmuls wrapper-side: (119, 22) @ (22, D) -> (119, D).
    fused = ELECTRON_CONFIG @ weight                   # (119, D) float32

    # Lane-dense output: pad D up to a multiple of 128 (sliced off on return).
    d_pad = ((d + 127) // 128) * 128
    if d_pad != d:
        fused = jnp.pad(fused, ((0, 0), (0, d_pad - d)))
        bias = jnp.pad(bias, (0, d_pad - d))
    bias2d = bias.reshape(1, d_pad).astype(jnp.float32)
    fused = fused.astype(jnp.float32)

    # Pad the atom axis to a multiple of the tile (padded ids -> element 0,
    # those rows are sliced off below).
    ta = atoms_per_tile
    n_pad = pl.cdiv(n_a, ta) * ta
    z_p = z.astype(jnp.int32)
    if n_pad != n_a:
        z_p = jnp.pad(z_p, ((0, 0), (0, n_pad - n_a)))

    grid = (n_pad // ta,)
    out = pl.pallas_call(
        _embedding_kernel,
        out_shape=jax.ShapeDtypeStruct((1, n_pad, d_pad), jnp.float32),
        grid_spec=pltpu.PrefetchScalarGridSpec(
            num_scalar_prefetch=0,
            grid=grid,
            in_specs=[
                pl.BlockSpec((1, ta), lambda i: (0, i)),                 # z tile
                pl.BlockSpec((NUM_ELEMENTS, d_pad), lambda i: (0, 0)),   # fused
                pl.BlockSpec((1, d_pad), lambda i: (0, 0)),              # bias
            ],
            out_specs=pl.BlockSpec((None, ta, d_pad), lambda i: (0, i, 0)),
        ),
        compiler_params=pltpu.CompilerParams(
            dimension_semantics=("parallel",)),
    )(z_p, fused, bias2d)

    return out[:, :n_a, :d]


# ----------------------------------------------------------------------------
# Parameter init (deterministic, mimics nn.Linear's U(-1/sqrt(fan_in), ...))
# ----------------------------------------------------------------------------
def init_params(embedding_dim: int, key: jax.Array):
    kw, kb = jax.random.split(key)
    bound = 1.0 / jnp.sqrt(jnp.float32(NUM_ORBITALS))
    # Stored as (in_features, out_features) = (22, D) for lane-dense output.
    weight = jax.random.uniform(kw, (NUM_ORBITALS, embedding_dim),
                                minval=-bound, maxval=bound, dtype=jnp.float32)
    bias = jax.random.uniform(kb, (embedding_dim,),
                              minval=-bound, maxval=bound, dtype=jnp.float32)
    return weight, bias


if __name__ == "__main__":
    key = jax.random.PRNGKey(0)
    kz, kp = jax.random.split(key)

    embedding_dim = 128   # module default
    n_a = 300             # number of atoms (non-multiple: exercises padding)

    # Example nuclear charges in [1, 118]
    z = jax.random.randint(kz, (1, n_a), minval=1, maxval=119, dtype=jnp.int32)
    weight, bias = init_params(embedding_dim, kp)

    out = nuclear_embedding(z, weight, bias, atoms_per_tile=256)
    out = jax.block_until_ready(out)

    # Pure-JAX reference check (unfused, like the PyTorch module)
    ref = jnp.take(ELECTRON_CONFIG, z[0], axis=0) @ weight + bias  # (n_a, D)
    ref = ref[None]                                                # (1, n_a, D)
    assert out.shape == (1, n_a, embedding_dim)
    assert jnp.allclose(out, ref, atol=1e-4, rtol=1e-4)

    print("KERNEL_OK")
</pallas_src>

<mosaic_0001>
module attributes {stable_mosaic.version = 11 : i64} {
  func.func @_embedding_kernel(%arg0: i32, %arg1: memref<1x256xi32, #tpu.memory_space<vmem>>, %arg2: memref<119x128xf32, #tpu.memory_space<vmem>>, %arg3: memref<1x128xf32, #tpu.memory_space<vmem>>, %arg4: memref<1x256x128xf32, #tpu.memory_space<vmem>>) attributes {dimension_semantics = [#tpu.dimension_semantics<parallel>], iteration_bounds = array<i64: 2>, scalar_prefetch = 0 : i64, scratch_operands = 0 : i64, tpu.core_type = #tpu.core_type<tc>, window_params = [{transform_indices = @transform_0, window_bounds = array<i64: 1, 256>}, {pipeline_mode = #tpu.pipeline_mode<synchronous>, transform_indices = @transform_1, window_bounds = array<i64: 119, 128>}, {pipeline_mode = #tpu.pipeline_mode<synchronous>, transform_indices = @transform_2, window_bounds = array<i64: 1, 128>}, {transform_indices = @transform_3, window_bounds = array<i64: 1, 256, 128>}]} {
    %c0 = arith.constant 0 : index
    %c0_0 = arith.constant 0 : index
    %0 = vector.load %arg1[%c0, %c0_0] : memref<1x256xi32, #tpu.memory_space<vmem>>, vector<1x256xi32>
    %1 = vector.shape_cast %0 : vector<1x256xi32> to vector<256xi32>
    %2 = tpu.iota {dimensions = array<i32: 1>} : vector<256x119xi32>
    %3 = vector.shape_cast %1 : vector<256xi32> to vector<256x1xi32>
    %4 = vector.broadcast %3 : vector<256x1xi32> to vector<256x119xi32>
    %5 = arith.cmpi eq, %4, %2 : vector<256x119xi32>
    %6 = arith.extui %5 : vector<256x119xi1> to vector<256x119xi32>
    %7 = arith.sitofp %6 : vector<256x119xi32> to vector<256x119xf32>
    %c0_1 = arith.constant 0 : index
    %c0_2 = arith.constant 0 : index
    %8 = vector.load %arg2[%c0_1, %c0_2] : memref<119x128xf32, #tpu.memory_space<vmem>>, vector<119x128xf32>
    %cst = arith.constant dense<0.000000e+00> : vector<256x128xf32>
    %9 = tpu.matmul %7, %8, %cst {dimension_numbers = #tpu.dot_dimension_numbers<[1], [0], [0], [1], [0, 0, 1, 1], [], []>} : vector<256x119xf32>, vector<119x128xf32>, vector<256x128xf32> -> vector<256x128xf32>
    %c0_3 = arith.constant 0 : index
    %c0_4 = arith.constant 0 : index
    %10 = vector.load %arg3[%c0_3, %c0_4] : memref<1x128xf32, #tpu.memory_space<vmem>>, vector<1x128xf32>
    %11 = vector.broadcast %10 : vector<1x128xf32> to vector<256x128xf32>
    %12 = arith.addf %9, %11 : vector<256x128xf32>
    %c0_5 = arith.constant 0 : index
    %c0_6 = arith.constant 0 : index
    %c0_7 = arith.constant 0 : index
    %13 = vector.load %arg4[%c0_5, %c0_6, %c0_7] : memref<1x256x128xf32, #tpu.memory_space<vmem>>, vector<1x256x128xf32>
    %14 = vector.shape_cast %13 : vector<1x256x128xf32> to vector<256x128xf32>
    %15 = vector.shape_cast %12 : vector<256x128xf32> to vector<1x256x128xf32>
    tpu.vector_store %arg4[%c0_5, %c0_6, %c0_7], %15 {strides = array<i32>} : memref<1x256x128xf32, #tpu.memory_space<vmem>>, vector<1x256x128xf32>,
    return
  }
  func.func @transform_0(%arg0: i32) -> (i32, i32) {
    %c0_i32 = arith.constant 0 : i32
    %c0_i32_0 = arith.constant 0 : i32
    return %c0_i32, %arg0 : i32, i32
  }
  func.func @transform_1(%arg0: i32) -> (i32, i32) {
    %c0_i32 = arith.constant 0 : i32
    %c0_i32_0 = arith.constant 0 : i32
    %c0_i32_1 = arith.constant 0 : i32
    return %c0_i32, %c0_i32_0 : i32, i32
  }
  func.func @transform_2(%arg0: i32) -> (i32, i32) {
    %c0_i32 = arith.constant 0 : i32
    %c0_i32_0 = arith.constant 0 : i32
    %c0_i32_1 = arith.constant 0 : i32
    return %c0_i32, %c0_i32_0 : i32, i32
  }
  func.func @transform_3(%arg0: i32) -> (i32, i32, i32) {
    %c0_i32 = arith.constant 0 : i32
    %c0_i32_0 = arith.constant 0 : i32
    %c0_i32_1 = arith.constant 0 : i32
    return %c0_i32, %arg0, %c0_i32_0 : i32, i32, i32
  }
}

</mosaic_0001>

<bundles_post_ra>
// kernel: tpu_custom_call.1
= control target key start
LH: loop header
LB: loop body
LE: loop exit
PB: predicated region body
PF: predicated region fallthrough
CT: control target
= control target key end

     0   :  { %8 = vsyncpa [#allocation3], 0  ;;  %s1604_s0 = inlined_call_operand.hbm [shape: s32[1,512], index: 0, kind: input, shape index: {}]   ;;  %s1605_s1 = inlined_call_operand.hbm [shape: f32[119,128], index: 1, kind: input, shape index: {}]   ;;  %s1606_s2 = inlined_call_operand.vmem [shape: f32[1,128], index: 2, kind: input, shape index: {}]   ;;  %s1607_s3 = inlined_call_operand.hbm [shape: f32[1,512,128], index: 3, kind: output, shape index: {}]  }
   0x1   :  { %10 = vsyncpa [#allocation3 + $0x1], 0 }
   0x2   :  { %11 = vsyncpa [#allocation6], 0 }
   0x3   :  { %12 = vsyncpa [#allocation4], 0 }
   0x4   :  { %14 = vsyncpa [#allocation4 + $0x1], 0  ;;  %s1240_s12 = smov 0   ;;  %s1242_s13 = smov 0  }
   0x5   :  { %s1244_s14 = smov 0   ;;  %s1246_s15 = smov 0  }
   0x6 LB: > { %s130_s18 = sshll.u32 %s1605_s1, 4  ;;  %s1264_s19 = sadd.s32 4294967295, %s1212_s15   ;;  %s1212_s15 = sphi %s1246_s15, %s1617_s15   ;;  %s1208_s14 = sphi %s1244_s14, %s1616_s14   ;;  %s1204_s13 = sphi %s1242_s13, %s1615_s13   ;;  %s1200_s12 = sphi %s1240_s12, %s1614_s12   ;;  %s131_s18 = int_to_ptr.hbm [resolvable:$true] %s130_s18 }
   0x7   : > { %p867_p0 = scmp.ge.s32.totalorder %s1212_s15, 1  ;;  %p41_p1 = scmp.eq.s32.totalorder %s1264_s19, 0 }
   0x8   : > { %p119_p2 = scmp.lt.s32.totalorder %s1212_s15, 3  ;;  %s1214_s21 = smov [#allocation5]  }
   0x9   : > { %s132_s22 = sshll.u32 %s1214_s21, 4  ;;  %s1215_s23 = smov 128   ;;  %s133_s22 = int_to_ptr.vmem [resolvable:$true] %s132_s22 }
   0xa   : > { %p1269_p3 = pnand %p867_p0, %p119_p2  ;;  %s1216_s24 = smov 8  }
   0xb   : > { %s866_s25 = sadd.s32 4294967294, %s1212_s15   ;;  %s1280_s26 = sadd.s32 1, %s1212_s15  }
   0xc   : > { %p1000_p4 = pneg %p1269_p3  ;;  %s27_s27 = sadd.s32 1, %s1208_s14 }
   0xd   : > { %s24_s28 = ssub.s32 %s1212_s15, %s1280_s26  ;;  %p34_p7 = scmp.ne.s32.totalorder %s1208_s14, %s1204_s13 }
   0xe   : > { %p1001_p6 = pnand %p1000_p4, %p41_p1  ;;  %p25_p8 = scmp.eq.s32.totalorder %s24_s28, 0 }
   0xf   : > { %p35_p9 = scmp.eq.s32.totalorder %s1212_s15, 0  ;;  %p40_p10 = scmp.ne.s32.totalorder %s1204_s13, %s1200_s12 }
  0x10   : > { %1003 = dma.hbm_to_vmem [thread:$0]  (!%p1001_p6), %s131_s18, 1920, %s133_s22, [#allocation6], %s1215_s23, %s1215_s23, %s1216_s24  }
  0x11   : > { %p106_p11 = scmp.eq.s32.totalorder %s1264_s19, 1  ;;  %p1296_p12 = por %p41_p1, %p40_p10 }
  0x12   : > { %s1292_s29 = scalar_select %p25_p8, %s1208_s14, %s27_s27  }
  0x13   : > { %p1300_p13 = por %p106_p11, %p34_p7  ;;  %p112_p0 = scmp.eq.s32.totalorder %s866_s25, 1 }
  0x14   : > { %p36_p2 = por %p35_p9, %p34_p7  ;;  %s149_s5 = sand.u32 1, %s1208_s14  }
  0x15   : > { %p1305_p4 = por %p112_p0, %p40_p10  ;;  %p1013_p6 = scmp.lt.s32.totalorder %s1212_s15, 2 }
  0x16   : > { %s870_s7 = sshll.u32 %s149_s5, 1  ;;  %s871_s8 = sshll.u32 %s1212_s15, 1 }
  0x17   : > { %s157_s11 = scalar_lea.hbm %s1604_s0, %s871_s8  ;;  %s153_s17 = scalar_lea.vmem [#allocation2], %s870_s7 }
  0x18   : > { %s159_s16 = sshll.u32 %s157_s11, 4  ;;  %s161_s18 = sshll.u32 %s153_s17, 4  ;;  %s160_s16 = int_to_ptr.hbm [resolvable:$true] %s159_s16  ;;  %s162_s18 = int_to_ptr.vmem [resolvable:$true] %s161_s18 }
  0x19   : > { %p1314_p8 = pnand %p1013_p6, %p36_p2  ;;  %s150_s22 = scalar_lea.sflag [#allocation3], %s149_s5 }
  0x1a   : > { %s1112_s23 = sshra.s32 %s160_s16, 4  ;;  %s1119_s28 = scalar_lea.hbm %s1604_s0, 4  ;;  %s1113_s23 = int_to_ptr.hbm [resolvable:$true] %s1112_s23 }
  0x1b   : > { %s1114_s24 = scalar_lea.hbm %s1113_s23, 2  ;;  %p1116_p9 = pneg %p1314_p8 }
  0x1c   : > { %p1115_p7 = scmp.ne.s32.totalorder %s1113_s23, %s1114_s24  ;;  %p1120_p0 = scmp.lt.s32.totalorder %s1113_s23, %s1604_s0 }
  0x1d   : > { %p1121_p2 = scmp.lt.s32.totalorder %s1119_s28, %s1114_s24 }
  0x1e   : > { %p1117_p10 = pnand %p1116_p9, %p1115_p7 }
  0x1f   : > { %p1122_p6 = por %p1121_p2, %p1120_p0 }
  0x20   : > { %p1118_p11 = pneg %p1117_p10 }
  0x22   : > { %p1123_p5 = pnand %p1122_p6, %p1118_p11 }
  0x24   : > { %1126 = shalt.err (!%p1123_p5)
}
  0x25   : > { %1007 = dma.hbm_to_vmem [thread:$0]  (!%p1314_p8), %s160_s16, 32, %s162_s18, %s150_s22  }
  0x26   : > { %170 = sbr.rel (%p1269_p3) target bundleno = 475 (0x1db), region = 32  ;;  %s1331_s5 = sand.u32 (!%p1269_p3), 1, %s1204_s13  }
  0x27   : > { %s873_s9 = sshll.u32 (!%p1269_p3), %s1331_s5, 1  ;;  %s173_s10 = scalar_lea.sflag (!%p1269_p3), [#allocation3], %s1331_s5 }
  0x28   : > { %s176_s11 = scalar_lea.vmem (!%p1269_p3), [#allocation2], %s873_s9 }
  0x2b   : > { %1187 = dma.done.wait (%p1296_p12), %s173_s10, 32  }
  0x2c   : > { %1189 = vsyncadd (%p1296_p12), %s173_s10, 4294967264 }
  0x2d   : > { %1191 = dma.done.wait (%p41_p1), [#allocation6], 1920  }
  0x2e   : > { %1193 = vsyncadd (%p41_p1), [#allocation6], 4294965376  ;;  %v208_v0 = vlaneseq  ;;  %v207_v3 = vld [vmem:[%s176_s11] sm:$0x3]  ;;  %v516_v13 = vld [vmem:[#allocation5 + $0x70] sm:$0x7f] }
  0x2f   : > { %v210_v4 = vperm.slane %v207_v3, 0  ;;  %v211_v5 = vperm.slane %v207_v3, 1  ;;  %vm618_vm0 = vcmask 1046528   ;;  %v515_v15 = vld [vmem:[#allocation5 + $0x68] sm:$0xff]  ;;  %v514_v16 = vld [vmem:[#allocation5 + $0x60] sm:$0xff]  ;;  %v513_v17 = vld [vmem:[#allocation5 + $0x58] sm:$0xff] }
  0x30   : > { %v1344_v1 = vshrl.u32 %v208_v0, 7  ;;  %908 = vmatpush.msk.msra.mxu0 %vm618_vm0, %v516_v13  ;;  %948 = vmatpush.msk.msra.mxu2 %vm618_vm0, %v516_v13  ;;  %v512_v18 = vld [vmem:[#allocation5 + $0x50] sm:$0xff]  ;;  %v511_v20 = vld [vmem:[#allocation5 + $0x48] sm:$0xff]  ;;  %v510_v21 = vld [vmem:[#allocation5 + $0x40] sm:$0xff]  ;;  %v1386_v33 = vand.u32 127, %v208_v0  ;;  %vm521_vm1 = vcmask 973824  }
  0x31   : > { %v1349_v6 = vperm.slane %v210_v4, 0  ;;  %v1351_v7 = vperm.slane %v211_v5, 0  ;;  %947 = vmatpush.msk.msra.mxu1 %vm618_vm0, %v516_v13  ;;  %949 = vmatpush.msk.msra.mxu3 %vm618_vm0, %v516_v13  ;;  %v509_v22 = vld [vmem:[#allocation5 + $0x38] sm:$0xff]  ;;  %v508_v23 = vld [vmem:[#allocation5 + $0x30] sm:$0xff]  ;;  %v507_v24 = vld [vmem:[#allocation5 + $0x28] sm:$0xff]  ;;  %v1217_v37 = vmov 0.0  }
  0x32   : > { %1056 = vset.pattern.permute.xlu1 %v1344_v1  ;;  %1054 = vset.pattern.permute.xlu0 %v1344_v1  ;;  %v221_v2 = vadd.s32 8, %v1344_v1  ;;  %v263_v8 = vadd.s32 64, %v1344_v1  ;;  %v269_v9 = vadd.s32 72, %v1344_v1  ;;  %v227_v10 = vadd.s32 16, %v1344_v1  ;;  %v506_v25 = vld [vmem:[#allocation5 + $0x20] sm:$0xff]  ;;  %v505_v26 = vld [vmem:[#allocation5 + $0x18] sm:$0xff] }
  0x33   : > { %v275_v11 = vadd.s32 80, %v1344_v1  ;;  %v233_v12 = vadd.s32 24, %v1344_v1  ;;  %v281_v14 = vadd.s32 88, %v1344_v1  ;;  %624 = vmatpush.msra.mxu0 %v515_v15  ;;  %951 = vmatpush.msra.mxu2 %v515_v15  ;;  %v239_v19 = vadd.s32 32, %v1344_v1  ;;  %v504_v27 = vld [vmem:[#allocation5 + $0x10] sm:$0xff]  ;;  %v503_v29 = vld [vmem:[#allocation5 + $0x8] sm:$0xff] }
  0x34   : > { %1058 = vset.pattern.permute.xlu2 %v221_v2  ;;  %950 = vmatpush.msra.mxu1 %v515_v15  ;;  %v287_v28 = vadd.s32 96, %v1344_v1  ;;  %v293_v30 = vadd.s32 104, %v1344_v1  ;;  %v502_v31 = vld [vmem:[#allocation5] sm:$0xff]  ;;  %v245_v32 = vadd.s32 40, %v1344_v1  ;;  %v299_v40 = vadd.s32 112, %v1344_v1  ;;  %s875_s20 = sshll.u32 %s1331_s5, 8 }
  0x35   : > { %625 = vmatpush.msra.mxu0 %v514_v16  ;;  %954 = vmatpush.msra.mxu2 %v514_v16  ;;  %v257_v41 = vadd.s32 56, %v1344_v1  ;;  %v251_v44 = vadd.s32 48, %v1344_v1  ;;  %v305_v50 = vadd.s32 120, %v1344_v1  ;;  %s1486_s17 = scalar_lea.vmem [#allocation7], %s875_s20  ;;  %s946_s18 = sshll.u32 %s1264_s19, 8 }
  0x36   : > { %952 = vmatpush.msra.mxu3 %v515_v15  ;;  %953 = vmatpush.msra.mxu1 %v514_v16  ;;  %s779_s23 = scalar_lea.hbm %s1607_s3, %s946_s18  ;;  %s780_s24 = sshll.u32 %s1486_s17, 4  ;;  %s781_s24 = int_to_ptr.vmem [resolvable:$true] %s780_s24 }
  0x37   : > { %626 = vmatpush.msra.mxu0 %v513_v17  ;;  %957 = vmatpush.msra.mxu2 %v513_v17  ;;  %s782_s25 = sshll.u32 %s779_s23, 4  ;;  %s768_s27 = scalar_lea.sflag [#allocation4], %s1331_s5  ;;  %s783_s25 = int_to_ptr.hbm [resolvable:$true] %s782_s25 }
  0x38   : > { %955 = vmatpush.msra.mxu3 %v514_v16  ;;  %956 = vmatpush.msra.mxu1 %v513_v17  ;;  %s1156_s28 = sshra.s32 %s783_s25, 4  ;;  %s1162_s9 = scalar_lea.hbm %s1607_s3, 512  ;;  %s1157_s28 = int_to_ptr.hbm [resolvable:$true] %s1156_s28 }
  0x39   : > { %627 = vmatpush.msra.mxu0 %v512_v18  ;;  %960 = vmatpush.msra.mxu2 %v512_v18  ;;  %s1158_s19 = scalar_lea.hbm %s1157_s28, 256  ;;  %p1163_p12 = scmp.lt.s32.totalorder %s1157_s28, %s1607_s3 }
  0x3a   : > { %217 = vperm.xlu1 %1056, %v1349_v6   ;;  %314 = vperm.xlu0 %1054, %v1351_v7   ;;  %p1159_p1 = scmp.ne.s32.totalorder %s1157_s28, %s1158_s19  ;;  %p1164_p8 = scmp.lt.s32.totalorder %s1162_s9, %s1158_s19 }
  0x3b   : > { %628 = vmatpush.msra.mxu0 %v511_v20  ;;  %963 = vmatpush.msra.mxu2 %v511_v20 }
  0x3c   : > { %320 = vperm.xlu2 %1058, %v1351_v7   ;;  %959 = vmatpush.msra.mxu1 %v512_v18  ;;  %p1160_p3 = pnand %p1159_p1, %p1300_p13  ;;  %p1165_p7 = por %p1164_p8, %p1163_p12 }
  0x3d   : > { %629 = vmatpush.msra.mxu0 %v510_v21  ;;  %966 = vmatpush.msra.mxu2 %v510_v21 }
  0x3e   : > { %958 = vmatpush.msra.mxu3 %v513_v17  ;;  %962 = vmatpush.msra.mxu1 %v511_v20  ;;  %p1161_p5 = pneg %p1160_p3 }
  0x3f   : > { %630 = vmatpush.msra.mxu0 %v509_v22  ;;  %969 = vmatpush.msra.mxu2 %v509_v22 }
  0x40   : > { %961 = vmatpush.msra.mxu3 %v512_v18  ;;  %965 = vmatpush.msra.mxu1 %v510_v21  ;;  %p1166_p9 = pnand %p1165_p7, %p1161_p5 }
  0x41   : > { %631 = vmatpush.msra.mxu0 %v508_v23  ;;  %972 = vmatpush.msra.mxu2 %v508_v23 }
  0x42   : > { %1057 = vset.pattern.permute.xlu1 %v263_v8  ;;  %1055 = vset.pattern.permute.xlu0 %v263_v8 }
  0x43   : > { %632 = vmatpush.msra.mxu0 %v507_v24  ;;  %975 = vmatpush.msra.mxu2 %v507_v24 }
  0x44   : > { %1059 = vset.pattern.permute.xlu2 %v269_v9  ;;  %968 = vmatpush.msra.mxu1 %v509_v22 }
  0x45   : > { %633 = vmatpush.msra.mxu0 %v506_v25  ;;  %978 = vmatpush.msra.mxu2 %v506_v25 }
  0x46   : > { %964 = vmatpush.msra.mxu3 %v511_v20  ;;  %971 = vmatpush.msra.mxu1 %v508_v23 }
  0x47   : > { %634 = vmatpush.msra.mxu0 %v505_v26  ;;  %981 = vmatpush.msra.mxu2 %v505_v26 }
  0x48   : > { %967 = vmatpush.msra.mxu3 %v510_v21  ;;  %974 = vmatpush.msra.mxu1 %v507_v24 }
  0x49   : > { %635 = vmatpush.msra.mxu0 %v504_v27  ;;  %984 = vmatpush.msra.mxu2 %v504_v27 }
  0x4a   : > { %265 = vperm.xlu1 %1057, %v1349_v6   ;;  %362 = vperm.xlu0 %1055, %v1351_v7  }
  0x4b   : > { %636 = vmatpush.msra.mxu0 %v503_v29  ;;  %987 = vmatpush.msra.mxu2 %v503_v29 }
  0x4c   : > { %368 = vperm.xlu2 %1059, %v1351_v7   ;;  %977 = vmatpush.msra.mxu1 %v506_v25 }
  0x4d   : > { %970 = vmatpush.msra.mxu3 %v509_v22  ;;  %637 = vmatpush.msra.mxu0 %v502_v31 }
  0x4e   : > { %990 = vmatpush.msra.mxu2 %v502_v31  ;;  %980 = vmatpush.msra.mxu1 %v505_v26 }
  0x4f   : > { %973 = vmatpush.msra.mxu3 %v508_v23 }
  0x50   : > { %983 = vmatpush.msra.mxu1 %v504_v27 }
  0x51   : > { %976 = vmatpush.msra.mxu3 %v507_v24 }
  0x52   : > { %1060 = vset.pattern.permute.xlu1 %v221_v2  ;;  %1061 = vset.pattern.permute.xlu0 %v227_v10 }
  0x53   : > { %986 = vmatpush.msra.mxu1 %v503_v29  ;;  %979 = vmatpush.msra.mxu3 %v506_v25 }
  0x54   : > { %271 = vperm.xlu2 %1059, %v1349_v6  }
  0x55   : > { %989 = vmatpush.msra.mxu1 %v502_v31  ;;  %982 = vmatpush.msra.mxu3 %v505_v26  ;;  %v1481_v26 = vld [vmem:[%s1606_s2] ss:$0 sm:$0xff] }
  0x57   : > { %985 = vmatpush.msra.mxu3 %v504_v27 }
  0x59   : > { %988 = vmatpush.msra.mxu3 %v503_v29 }
  0x5a   : > { %223 = vperm.xlu1 %1060, %v1349_v6   ;;  %326 = vperm.xlu0 %1061, %v1351_v7  }
  0x5b   : > { %991 = vmatpush.msra.mxu3 %v502_v31 }
  0x5c   : > { %1063 = vset.pattern.permute.xlu2 %v227_v10 }
  0x62   : > { %1062 = vset.pattern.permute.xlu1 %v275_v11  ;;  %1065 = vset.pattern.permute.xlu0 %v281_v14 }
  0x64   : > { %229 = vperm.xlu2 %1063, %v1349_v6  }
  0x6a   : > { %374 = vperm.xlu1 %1062, %v1351_v7   ;;  %380 = vperm.xlu0 %1065, %v1351_v7  }
  0x6c   : > { %1064 = vset.pattern.permute.xlu2 %v233_v12 }
  0x72   : > { %277 = vperm.xlu1 %1062, %v1349_v6   ;;  %1070 = vset.pattern.permute.xlu0 %v239_v19 }
  0x74   : > { %332 = vperm.xlu2 %1064, %v1351_v7  }
  0x7a   : > { %1066 = vset.pattern.permute.xlu1 %v233_v12  ;;  %241 = vperm.xlu0 %1070, %v1349_v6  }
  0x7c   : > { %1067 = vset.pattern.permute.xlu2 %v281_v14 }
  0x82   : > { %235 = vperm.xlu1 %1066, %v1349_v6   ;;  %1074 = vset.pattern.permute.xlu0 %v293_v30 }
  0x84   : > { %283 = vperm.xlu2 %1067, %v1349_v6  }
  0x8a   : > { %1068 = vset.pattern.permute.xlu1 %v239_v19  ;;  %295 = vperm.xlu0 %1074, %v1349_v6  }
  0x8c   : > { %1069 = vset.pattern.permute.xlu2 %v287_v28 }
  0x92   : > { %338 = vperm.xlu1 %1068, %v1351_v7   ;;  %1077 = vset.pattern.permute.xlu0 %v257_v41 }
  0x94   : > { %386 = vperm.xlu2 %1069, %v1351_v7  }
  0x96   : > { %v321_v34 = vpop.permute.xlu2 %320 }
  0x97   : > { %vm423_vm4 = vcmp.eq.s32.totalorder %v321_v34, %v1386_v33 }
  0x98   : > { %v893_v42 = vsel %vm423_vm4, 1.0, %v1217_v37 }
  0x9a   : > { %1071 = vset.pattern.permute.xlu1 %v287_v28  ;;  %356 = vperm.xlu0 %1077, %v1351_v7  }
  0x9c   : > { %1072 = vset.pattern.permute.xlu2 %v245_v32 }
  0xa2   : > { %289 = vperm.xlu1 %1071, %v1349_v6   ;;  %1080 = vset.pattern.permute.xlu0 %v305_v50 }
  0xa4   : > { %344 = vperm.xlu2 %1072, %v1351_v7  }
  0xa6   : > { %v369_v43 = vpop.permute.xlu2 %368 }
  0xa7   : > { %vm431_vm7 = vcmp.eq.s32.totalorder %v369_v43, %v1386_v33 }
  0xa8   : > { %v901_v51 = vsel %vm431_vm7, 1.0, %v1217_v37 }
  0xaa   : > { %1073 = vset.pattern.permute.xlu1 %v293_v30 }
  0xac   : > { %v218_v35 = vpop.permute.xlu1 %217  ;;  %v315_v36 = vpop.permute.xlu0 %314  ;;  %247 = vperm.xlu2 %1072, %v1349_v6  }
  0xad   : > { %vm406_vm2 = vcmp.eq.s32.totalorder %v218_v35, %v1386_v33  ;;  %vm422_vm3 = vcmp.eq.s32.totalorder %v315_v36, %v1386_v33 }
  0xae   : > { %v876_v38 = vsel %vm406_vm2, 1.0, %v1217_v37  ;;  %v892_v39 = vsel %vm422_vm3, 1.0, %v1217_v37  ;;  %v272_v49 = vpop.permute.xlu2 %271 }
  0xaf   : > { %909 = vmatmul.msk.f32.vlgmr.msra.gmra.mxu0 %vm521_vm1, %v876_v38  ;;  %925 = vmatmul.msk.f32.vlgmr.msra.gmra.mxu2 %vm521_vm1, %v892_v39  ;;  %vm415_vm8 = vcmp.eq.s32.totalorder %v272_v49, %v1386_v33 }
  0xb0   : > { %v885_v52 = vsel %vm415_vm8, 1.0, %v1217_v37 }
  0xb2   : > { %392 = vperm.xlu1 %1073, %v1351_v7  }
  0xb4   : > { %1076 = vset.pattern.permute.xlu2 %v299_v40 }
  0xb7   : > { %926 = vmatmul.msk.f32.gmra.mxu2 %vm521_vm1, %v893_v42 }
  0xba   : > { %1075 = vset.pattern.permute.xlu1 %v251_v44 }
  0xbc   : > { %v266_v45 = vpop.permute.xlu1 %265  ;;  %v363_v46 = vpop.permute.xlu0 %362  ;;  %398 = vperm.xlu2 %1076, %v1351_v7  }
  0xbd   : > { %vm414_vm5 = vcmp.eq.s32.totalorder %v266_v45, %v1386_v33  ;;  %vm430_vm6 = vcmp.eq.s32.totalorder %v363_v46, %v1386_v33 }
  0xbe   : > { %v884_v47 = vsel %vm414_vm5, 1.0, %v1217_v37  ;;  %v900_v48 = vsel %vm430_vm6, 1.0, %v1217_v37  ;;  %v230_v53 = vpop.permute.xlu2 %229 }
  0xbf   : > { %917 = vmatmul.msk.f32.vlgmr.msra.gmra.mxu1 %vm521_vm1, %v884_v47  ;;  %933 = vmatmul.msk.f32.vlgmr.msra.gmra.mxu3 %vm521_vm1, %v900_v48  ;;  %vm408_vm11 = vcmp.eq.s32.totalorder %v230_v53, %v1386_v33 }
  0xc0   : > { %v878_v59 = vsel %vm408_vm11, 1.0, %v1217_v37 }
  0xc2   : > { %350 = vperm.xlu1 %1075, %v1351_v7  }
  0xc4   : > { %301 = vperm.xlu2 %1076, %v1349_v6  }
  0xc7   : > { %918 = vmatmul.msk.f32.gmra.mxu1 %vm521_vm1, %v885_v52  ;;  %934 = vmatmul.msk.f32.gmra.mxu3 %vm521_vm1, %v901_v51 }
  0xca   : > { %253 = vperm.xlu1 %1075, %v1349_v6  }
  0xcc   : > { %v224_v54 = vpop.permute.xlu1 %223  ;;  %v327_v55 = vpop.permute.xlu0 %326  ;;  %1079 = vset.pattern.permute.xlu2 %v257_v41 }
  0xcd   : > { %vm407_vm9 = vcmp.eq.s32.totalorder %v224_v54, %v1386_v33  ;;  %vm424_vm10 = vcmp.eq.s32.totalorder %v327_v55, %v1386_v33 }
  0xce   : > { %v877_v56 = vsel %vm407_vm9, 1.0, %v1217_v37  ;;  %v894_v57 = vsel %vm424_vm10, 1.0, %v1217_v37  ;;  %v333_v58 = vpop.permute.xlu2 %332 }
  0xcf   : > { %910 = vmatmul.msk.f32.gmra.mxu0 %vm521_vm1, %v877_v56  ;;  %927 = vmatmul.msk.f32.gmra.mxu2 %vm521_vm1, %v894_v57  ;;  %vm425_vm12 = vcmp.eq.s32.totalorder %v333_v58, %v1386_v33 }
  0xd0   : > { %v895_v60 = vsel %vm425_vm12, 1.0, %v1217_v37 }
  0xd2   : > { %1078 = vset.pattern.permute.xlu1 %v305_v50 }
  0xd4   : > { %259 = vperm.xlu2 %1079, %v1349_v6  }
  0xd7   : > { %911 = vmatmul.msk.f32.gmra.mxu0 %vm521_vm1, %v878_v59  ;;  %928 = vmatmul.msk.f32.gmra.mxu2 %vm521_vm1, %v895_v60 }
  0xda   : > { %404 = vperm.xlu1 %1078, %v1351_v7  }
  0xdc   : > { %v375_v61 = vpop.permute.xlu1 %374  ;;  %v381_v2 = vpop.permute.xlu0 %380 }
  0xdd   : > { %vm432_vm13 = vcmp.eq.s32.totalorder %v375_v61, %v1386_v33  ;;  %vm433_vm15 = vcmp.eq.s32.totalorder %v381_v2, %v1386_v33 }
  0xde   : > { %v902_v62 = vsel %vm432_vm13, 1.0, %v1217_v37  ;;  %v284_v1 = vpop.permute.xlu2 %283  ;;  %v903_v3 = vsel %vm433_vm15, 1.0, %v1217_v37 }
  0xdf   : > { %935 = vmatmul.msk.f32.gmra.mxu3 %vm521_vm1, %v902_v62  ;;  %vm417_vm0 = vcmp.eq.s32.totalorder %v284_v1, %v1386_v33 }
  0xe0   : > { %v887_v4 = vsel %vm417_vm0, 1.0, %v1217_v37 }
  0xe2   : > { %307 = vperm.xlu1 %1078, %v1349_v6  }
  0xe4   : > { %v278_v63 = vpop.permute.xlu1 %277 }
  0xe5   : > { %vm416_vm14 = vcmp.eq.s32.totalorder %v278_v63, %v1386_v33 }
  0xe6   : > { %v886_v0 = vsel %vm416_vm14, 1.0, %v1217_v37 }
  0xe7   : > { %919 = vmatmul.msk.f32.gmra.mxu1 %vm521_vm1, %v886_v0  ;;  %936 = vmatmul.msk.f32.gmra.mxu3 %vm521_vm1, %v903_v3 }
  0xec   : > { %v242_v9 = vpop.permute.xlu0 %241 }
  0xed   : > { %vm410_vm4 = vcmp.eq.s32.totalorder %v242_v9, %v1386_v33 }
  0xee   : > { %v387_v5 = vpop.permute.xlu2 %386  ;;  %v880_v10 = vsel %vm410_vm4, 1.0, %v1217_v37 }
  0xef   : > { %920 = vmatmul.msk.f32.gmra.mxu1 %vm521_vm1, %v887_v4  ;;  %vm434_vm2 = vcmp.eq.s32.totalorder %v387_v5, %v1386_v33 }
  0xf0   : > { %v904_v6 = vsel %vm434_vm2, 1.0, %v1217_v37 }
  0xf1   : > { %937 = vmatmul.msk.f32.gmra.mxu3 %vm521_vm1, %v904_v6 }
  0xf4   : > { %v236_v7 = vpop.permute.xlu1 %235 }
  0xf5   : > { %vm409_vm3 = vcmp.eq.s32.totalorder %v236_v7, %v1386_v33 }
  0xf6   : > { %v879_v8 = vsel %vm409_vm3, 1.0, %v1217_v37 }
  0xf7   : > { %912 = vmatmul.msk.f32.gmra.mxu0 %vm521_vm1, %v879_v8 }
  0xfc   : > { %v296_v19 = vpop.permute.xlu0 %295 }
  0xfd   : > { %vm419_vm9 = vcmp.eq.s32.totalorder %v296_v19, %v1386_v33 }
  0xfe   : > { %v345_v11 = vpop.permute.xlu2 %344  ;;  %v889_v21 = vsel %vm419_vm9, 1.0, %v1217_v37 }
  0xff   : > { %913 = vmatmul.msk.f32.gmra.mxu0 %vm521_vm1, %v880_v10  ;;  %vm427_vm7 = vcmp.eq.s32.totalorder %v345_v11, %v1386_v33 }
 0x100   : > { %v897_v16 = vsel %vm427_vm7, 1.0, %v1217_v37 }
 0x104   : > { %v339_v12 = vpop.permute.xlu1 %338 }
 0x105   : > { %vm426_vm5 = vcmp.eq.s32.totalorder %v339_v12, %v1386_v33 }
 0x106   : > { %v896_v13 = vsel %vm426_vm5, 1.0, %v1217_v37  ;;  %v248_v14 = vpop.permute.xlu2 %247 }
 0x107   : > { %929 = vmatmul.msk.f32.gmra.mxu2 %vm521_vm1, %v896_v13  ;;  %vm411_vm6 = vcmp.eq.s32.totalorder %v248_v14, %v1386_v33 }
 0x108   : > { %v881_v15 = vsel %vm411_vm6, 1.0, %v1217_v37 }
 0x109   : > { %914 = vmatmul.msk.f32.gmra.mxu0 %vm521_vm1, %v881_v15 }
 0x10c   : > { %v357_v35 = vpop.permute.xlu0 %356 }
 0x10d   : > { %vm429_vm14 = vcmp.eq.s32.totalorder %v357_v35, %v1386_v33 }
 0x10e   : > { %v899_v41 = vsel %vm429_vm14, 1.0, %v1217_v37 }
 0x10f   : > { %930 = vmatmul.msk.f32.gmra.mxu2 %vm521_vm1, %v897_v16 }
 0x114   : > { %v290_v17 = vpop.permute.xlu1 %289 }
 0x115   : > { %vm418_vm8 = vcmp.eq.s32.totalorder %v290_v17, %v1386_v33 }
 0x116   : > { %v888_v18 = vsel %vm418_vm8, 1.0, %v1217_v37  ;;  %v399_v20 = vpop.permute.xlu2 %398 }
 0x117   : > { %921 = vmatmul.msk.f32.gmra.mxu1 %vm521_vm1, %v888_v18  ;;  %vm436_vm12 = vcmp.eq.s32.totalorder %v399_v20, %v1386_v33 }
 0x118   : > { %v906_v28 = vsel %vm436_vm12, 1.0, %v1217_v37 }
 0x11e   : > { %v302_v22 = vpop.permute.xlu2 %301 }
 0x11f   : > { %922 = vmatmul.msk.f32.gmra.mxu1 %vm521_vm1, %v889_v21  ;;  %vm420_vm10 = vcmp.eq.s32.totalorder %v302_v22, %v1386_v33 }
 0x120   : > { %v890_v24 = vsel %vm420_vm10, 1.0, %v1217_v37 }
 0x124   : > { %v393_v23 = vpop.permute.xlu1 %392 }
 0x125   : > { %vm435_vm11 = vcmp.eq.s32.totalorder %v393_v23, %v1386_v33 }
 0x126   : > { %v905_v25 = vsel %vm435_vm11, 1.0, %v1217_v37 }
 0x127   : > { %938 = vmatmul.msk.f32.gmra.mxu3 %vm521_vm1, %v905_v25  ;;  %923 = vmatmul.msk.f32.gmra.mxu1 %vm521_vm1, %v890_v24 }
 0x12c   : > { %v639_v27 = vpop.f32.mrf.mxu0 }
 0x12d   : > { %v640_v29 = vadd.f32 %v1481_v26, %v639_v27 }
 0x12e   : > { %v260_v44 = vpop.permute.xlu2 %259 }
 0x12f   : > { %735 = vst [vmem:[%s1486_s17] sm:$0xff] %v640_v29  ;;  %939 = vmatmul.msk.f32.gmra.mxu3 %vm521_vm1, %v906_v28  ;;  %vm413_vm0 = vcmp.eq.s32.totalorder %v260_v44, %v1386_v33 }
 0x130   : > { %v883_v48 = vsel %vm413_vm0, 1.0, %v1217_v37 }
 0x132   : > { %v687_v30 = vpop.f32.mrf.mxu2 }
 0x133   : > { %v688_v31 = vadd.f32 %v1481_v26, %v687_v30 }
 0x134   : > { %v351_v32 = vpop.permute.xlu1 %350 }
 0x135   : > { %vm428_vm13 = vcmp.eq.s32.totalorder %v351_v32, %v1386_v33  ;;  %751 = vst [vmem:[%s1486_s17 + $0x80] sm:$0xff] %v688_v31 }
 0x136   : > { %v898_v34 = vsel %vm428_vm13, 1.0, %v1217_v37 }
 0x137   : > { %931 = vmatmul.msk.f32.gmra.mxu2 %vm521_vm1, %v898_v34 }
 0x13a   : > { %v690_v36 = vpop.f32.mrf.mxu2 }
 0x13b   : > { %v691_v38 = vadd.f32 %v1481_v26, %v690_v36 }
 0x13c   : > { %v663_v39 = vpop.f32.mrf.mxu1  ;;  %v254_v40 = vpop.permute.xlu1 %253 }
 0x13d   : > { %v664_v42 = vadd.f32 %v1481_v26, %v663_v39  ;;  %vm412_vm15 = vcmp.eq.s32.totalorder %v254_v40, %v1386_v33  ;;  %752 = vst [vmem:[%s1486_s17 + $0x88] sm:$0xff] %v691_v38 }
 0x13e   : > { %v882_v43 = vsel %vm412_vm15, 1.0, %v1217_v37 }
 0x13f   : > { %743 = vst [vmem:[%s1486_s17 + $0x40] sm:$0xff] %v664_v42  ;;  %915 = vmatmul.msk.f32.gmra.mxu0 %vm521_vm1, %v882_v43  ;;  %932 = vmatmul.msk.f32.gmra.mxu2 %vm521_vm1, %v899_v41 }
 0x142   : > { %v711_v45 = vpop.f32.mrf.mxu3 }
 0x143   : > { %v712_v46 = vadd.f32 %v1481_v26, %v711_v45 }
 0x144   : > { %v666_v47 = vpop.f32.mrf.mxu1 }
 0x145   : > { %759 = vst [vmem:[%s1486_s17 + $0xc0] sm:$0xff] %v712_v46  ;;  %v667_v49 = vadd.f32 %v1481_v26, %v666_v47 }
 0x147   : > { %744 = vst [vmem:[%s1486_s17 + $0x48] sm:$0xff] %v667_v49  ;;  %916 = vmatmul.msk.f32.gmra.mxu0 %vm521_vm1, %v883_v48 }
 0x14a   : > { %v714_v50 = vpop.f32.mrf.mxu3 }
 0x14b   : > { %v715_v51 = vadd.f32 %v1481_v26, %v714_v50 }
 0x14c   : > { %v642_v52 = vpop.f32.mrf.mxu0  ;;  %v405_v53 = vpop.permute.xlu1 %404 }
 0x14d   : > { %v643_v54 = vadd.f32 %v1481_v26, %v642_v52  ;;  %vm437_vm2 = vcmp.eq.s32.totalorder %v405_v53, %v1386_v33  ;;  %760 = vst [vmem:[%s1486_s17 + $0xc8] sm:$0xff] %v715_v51 }
 0x14e   : > { %v907_v55 = vsel %vm437_vm2, 1.0, %v1217_v37 }
 0x14f   : > { %736 = vst [vmem:[%s1486_s17 + $0x8] sm:$0xff] %v643_v54  ;;  %940 = vmatmul.msk.f32.gmra.mxu3 %vm521_vm1, %v907_v55 }
 0x152   : > { %v693_v56 = vpop.f32.mrf.mxu2 }
 0x153   : > { %v694_v57 = vadd.f32 %v1481_v26, %v693_v56 }
 0x154   : > { %v308_v58 = vpop.permute.xlu1 %307  ;;  %v645_v59 = vpop.f32.mrf.mxu0 }
 0x155   : > { %vm421_vm3 = vcmp.eq.s32.totalorder %v308_v58, %v1386_v33  ;;  %v646_v60 = vadd.f32 %v1481_v26, %v645_v59  ;;  %753 = vst [vmem:[%s1486_s17 + $0x90] sm:$0xff] %v694_v57 }
 0x156   : > { %v891_v61 = vsel %vm421_vm3, 1.0, %v1217_v37 }
 0x157   : > { %924 = vmatmul.msk.f32.gmra.mxu1 %vm521_vm1, %v891_v61  ;;  %737 = vst [vmem:[%s1486_s17 + $0x10] sm:$0xff] %v646_v60 }
 0x15a   : > { %v696_v62 = vpop.f32.mrf.mxu2 }
 0x15b   : > { %v697_v63 = vadd.f32 %v1481_v26, %v696_v62 }
 0x15d   : > { %754 = vst [vmem:[%s1486_s17 + $0x98] sm:$0xff] %v697_v63 }
 0x162   : > { %v717_v0 = vpop.f32.mrf.mxu3 }
 0x163   : > { %v718_v1 = vadd.f32 %v1481_v26, %v717_v0 }
 0x164   : > { %v669_v33 = vpop.f32.mrf.mxu1 }
 0x165   : > { %761 = vst [vmem:[%s1486_s17 + $0xd0] sm:$0xff] %v718_v1  ;;  %v670_v2 = vadd.f32 %v1481_v26, %v669_v33 }
 0x167   : > { %745 = vst [vmem:[%s1486_s17 + $0x50] sm:$0xff] %v670_v2 }
 0x16a   : > { %v720_v4 = vpop.f32.mrf.mxu3 }
 0x16b   : > { %v721_v5 = vadd.f32 %v1481_v26, %v720_v4 }
 0x16c   : > { %v672_v37 = vpop.f32.mrf.mxu1 }
 0x16d   : > { %v673_v3 = vadd.f32 %v1481_v26, %v672_v37  ;;  %762 = vst [vmem:[%s1486_s17 + $0xd8] sm:$0xff] %v721_v5 }
 0x16f   : > { %746 = vst [vmem:[%s1486_s17 + $0x58] sm:$0xff] %v673_v3 }
 0x174   : > { %v648_v6 = vpop.f32.mrf.mxu0  ;;  %v723_v8 = vpop.f32.mrf.mxu3 }
 0x175   : > { %v649_v7 = vadd.f32 %v1481_v26, %v648_v6  ;;  %v724_v9 = vadd.f32 %v1481_v26, %v723_v8 }
 0x177   : > { %738 = vst [vmem:[%s1486_s17 + $0x18] sm:$0xff] %v649_v7 }
 0x178   : > { %763 = vst [vmem:[%s1486_s17 + $0xe0] sm:$0xff] %v724_v9 }
 0x17c   : > { %v651_v10 = vpop.f32.mrf.mxu0 }
 0x17d   : > { %v652_v11 = vadd.f32 %v1481_v26, %v651_v10 }
 0x17f   : > { %739 = vst [vmem:[%s1486_s17 + $0x20] sm:$0xff] %v652_v11 }
 0x186   : > { %v654_v12 = vpop.f32.mrf.mxu0 }
 0x187   : > { %v655_v13 = vadd.f32 %v1481_v26, %v654_v12 }
 0x189   : > { %740 = vst [vmem:[%s1486_s17 + $0x28] sm:$0xff] %v655_v13 }
 0x18a   : > { %v699_v14 = vpop.f32.mrf.mxu2 }
 0x18b   : > { %v700_v15 = vadd.f32 %v1481_v26, %v699_v14 }
 0x18d   : > { %755 = vst [vmem:[%s1486_s17 + $0xa0] sm:$0xff] %v700_v15 }
 0x192   : > { %v702_v16 = vpop.f32.mrf.mxu2 }
 0x193   : > { %v703_v17 = vadd.f32 %v1481_v26, %v702_v16 }
 0x194   : > { %v675_v18 = vpop.f32.mrf.mxu1 }
 0x195   : > { %v676_v19 = vadd.f32 %v1481_v26, %v675_v18  ;;  %756 = vst [vmem:[%s1486_s17 + $0xa8] sm:$0xff] %v703_v17 }
 0x197   : > { %747 = vst [vmem:[%s1486_s17 + $0x60] sm:$0xff] %v676_v19 }
 0x19c   : > { %v678_v20 = vpop.f32.mrf.mxu1 }
 0x19d   : > { %v679_v21 = vadd.f32 %v1481_v26, %v678_v20 }
 0x19f   : > { %748 = vst [vmem:[%s1486_s17 + $0x68] sm:$0xff] %v679_v21 }
 0x1a4   : > { %v681_v22 = vpop.f32.mrf.mxu1 }
 0x1a5   : > { %v682_v23 = vadd.f32 %v1481_v26, %v681_v22 }
 0x1a7   : > { %749 = vst [vmem:[%s1486_s17 + $0x70] sm:$0xff] %v682_v23 }
 0x1aa   : > { %v726_v24 = vpop.f32.mrf.mxu3 }
 0x1ab   : > { %v727_v25 = vadd.f32 %v1481_v26, %v726_v24 }
 0x1ad   : > { %764 = vst [vmem:[%s1486_s17 + $0xe8] sm:$0xff] %v727_v25 }
 0x1b2   : > { %v729_v27 = vpop.f32.mrf.mxu3 }
 0x1b3   : > { %v730_v28 = vadd.f32 %v1481_v26, %v729_v27 }
 0x1b5   : > { %765 = vst [vmem:[%s1486_s17 + $0xf0] sm:$0xff] %v730_v28 }
 0x1ba   : > { %v705_v29 = vpop.f32.mrf.mxu2 }
 0x1bb   : > { %v706_v30 = vadd.f32 %v1481_v26, %v705_v29 }
 0x1bc   : > { %v657_v31 = vpop.f32.mrf.mxu0 }
 0x1bd   : > { %757 = vst [vmem:[%s1486_s17 + $0xb0] sm:$0xff] %v706_v30  ;;  %v658_v32 = vadd.f32 %v1481_v26, %v657_v31 }
 0x1bf   : > { %741 = vst [vmem:[%s1486_s17 + $0x30] sm:$0xff] %v658_v32 }
 0x1c2   : > { %v708_v34 = vpop.f32.mrf.mxu2 }
 0x1c3   : > { %v709_v35 = vadd.f32 %v1481_v26, %v708_v34 }
 0x1c4   : > { %v660_v36 = vpop.f32.mrf.mxu0 }
 0x1c5   : > { %v661_v38 = vadd.f32 %v1481_v26, %v660_v36  ;;  %758 = vst [vmem:[%s1486_s17 + $0xb8] sm:$0xff] %v709_v35 }
 0x1c7   : > { %742 = vst [vmem:[%s1486_s17 + $0x38] sm:$0xff] %v661_v38 }
 0x1d2   : > { %v732_v39 = vpop.f32.mrf.mxu3 }
 0x1d3   : > { %v733_v40 = vadd.f32 %v1481_v26, %v732_v39 }
 0x1d4   : > { %v684_v41 = vpop.f32.mrf.mxu1 }
 0x1d5   : > { %766 = vst [vmem:[%s1486_s17 + $0xf8] sm:$0xff] %v733_v40  ;;  %v685_v42 = vadd.f32 %v1481_v26, %v684_v41 }
 0x1d7   : > { %750 = vst [vmem:[%s1486_s17 + $0x78] sm:$0xff] %v685_v42 }
 0x1d8   : > { %1169 = shalt.err (!%p1166_p9)
}
 0x1d9   : > { %s1218_s5 = smov 128   ;;  %s1219_s20 = smov 8  }
 0x1da   : > { %998 = dma.vmem_to_hbm [thread:$0]  (%p1300_p13), %s781_s24, 4096, %s783_s25, %s768_s27, %s1218_s5, %s1218_s5, %s1219_s20  }
 0x1db PF: > { %s797_s30 = sand.u32 1, %s1200_s12   ;;  %p1613_p10 = scmp.ge.s32.totalorder %s1212_s15, 2 }
 0x1dc   : > { %s798_s16 = scalar_lea.sflag [#allocation4], %s797_s30 }
 0x1dd   : > { %p1009_p11 = pnand %p1613_p10, %p1305_p4 }
 0x1df   : > { %p1010_p0 = pneg %p1009_p11 }
 0x1e1   : > { %1195 = dma.done.wait (%p1010_p0), %s798_s16, 4096  }
 0x1e2   : > { %1197 = vsyncadd (%p1010_p0), %s798_s16, 4294963200  ;;  %p17_p2 = scmp.ge.s32.totalorder %s1280_s26, 4   ;;  %s1614_s12 = smov %s1204_s13 }
 0x1e3   : > { %s1615_s13 = smov %s1208_s14  ;;  %s1616_s14 = smov %s1292_s29 }
 0x1e4   : > { %s1617_s15 = smov %s1280_s26  ;;  %19 = sbr.rel (!%p17_p2) target bundleno = 6 (0x6), region = 81 }
 0x1e9   :  { %804 = vsyncpa [#allocation3], 1 }
 0x1ea   :  { %806 = vsyncpa [#allocation3 + $0x1], 1 }
 0x1eb   :  { %807 = vsyncpa [#allocation6], 1 }
 0x1ec   :  { %808 = vsyncpa [#allocation4], 1 }
 0x1ed   :  { %810 = vsyncpa [#allocation4 + $0x1], 1 }

</bundles_post_ra>
